<compile_context>
chip_gen: v5e
topology: v5e:2x2
jax: 0.10.0
libtpu: 0.0.40
codegen_flags: <defaults>
</compile_context>

<pallas_src>
import math
import functools

import jax
import jax.numpy as jnp
from jax.experimental import pallas as pl
from jax.experimental.pallas import tpu as pltpu


def mab_kernel(x_ref, y_ref,
               wq_ref, bq_ref,
               wkv_ref, bkv_ref,
               wo_ref, bo_ref,
               o_ref,
               o_acc,
               *, num_heads, batch_tile, lq, lk):
    """One batch-tile per grid step.

    x_ref  : (Bt*Lq, Qp)      VMEM  bf16  (rows ordered b-major, then q; Qp=128-padded)
    y_ref  : (Bt*Lk, Kp)      VMEM  bf16
    wq_ref : (Qp, Vdim)       VMEM  bf16  (pre-transposed, zero-padded rows)
    wkv_ref: (Kp, 2*Vdim)     VMEM  bf16  ([Wk | Wv] fused)
    wo_ref : (Vdim, Vp)       VMEM  bf16  (unsplit; output padded to Vp lanes)
    b*_ref : (1, cols)        VMEM  f32
    o_ref  : (Bt*Lq, Vp)      VMEM        (lane-dense padded output slab)
    o_acc  : (Bt*Lq, Vdim)    VMEM  f32   scratch: per-head residual+context rows
    """
    H = num_heads
    vdim = wq_ref.shape[1]
    d = vdim // H
    scale = 1.0 / math.sqrt(d)
    rows_q = batch_tile * lq

    x = x_ref[...]                                   # (Bt*Lq, Qp) bf16
    y = y_ref[...]                                   # (Bt*Lk, Kp) bf16
    cd = x.dtype                                     # matmul compute dtype

    # --- projections: batch*seq flattened into M; K/V fused into one matmul ---
    q2 = jnp.dot(x, wq_ref[...], preferred_element_type=jnp.float32) + bq_ref[...]
    kv2 = jnp.dot(y, wkv_ref[...], preferred_element_type=jnp.float32) + bkv_ref[...]

    # split the leading (row) dim back into (batch, seq); layout-free reshapes
    q3 = q2.reshape(batch_tile, lq, vdim)            # (Bt, Lq, Vdim)   f32
    kv3 = kv2.reshape(batch_tile, lk, 2 * vdim)      # (Bt, Lk, 2*Vdim) f32

    # Residual: torch computes O = Q_split + Attn @ V_split per head; seeding
    # the accumulator with the full Q projection covers all heads at once.
    o_acc[...] = q2

    for h in range(H):                               # static unroll (H small)
        qh = q3[:, :, h * d:(h + 1) * d]                         # (Bt, Lq, d) f32
        kh = kv3[:, :, h * d:(h + 1) * d]                        # (Bt, Lk, d) f32
        vh = kv3[:, :, vdim + h * d: vdim + (h + 1) * d]         # (Bt, Lk, d) f32

        # scaled dot-product attention, batched over the batch tile.
        logits = jnp.einsum("bqd,bkd->bqk", qh.astype(cd), kh.astype(cd),
                            preferred_element_type=jnp.float32) * scale
        m = jnp.max(logits, axis=-1, keepdims=True)
        p = jnp.exp(logits - m)                                   # EUP, f32
        attn = p * pl.reciprocal(jnp.sum(p, axis=-1, keepdims=True), approx=True)

        ctx = jnp.einsum("bqk,bkd->bqd", attn.astype(cd), vh.astype(cd),
                         preferred_element_type=jnp.float32)      # (Bt, Lq, d) f32

        # accumulate the head's context into its contiguous feature columns
        o_acc[:, h * d:(h + 1) * d] += ctx.reshape(rows_q, d)

    # --- single output projection: one matmul with K = Vdim (all heads fused) ---
    o_rows = o_acc[...].astype(cd)                                # (Bt*Lq, Vdim) bf16
    out = jnp.dot(o_rows, wo_ref[...],
                  preferred_element_type=jnp.float32) + bo_ref[...]
    o_ref[...] = out.astype(o_ref.dtype)


def _round_up(x, m):
    return (x + m - 1) // m * m


def _pick_batch_tile(B, L, target_rows=2048, min_grid_steps=2):
    """Largest divisor of B with L*Bt <= target_rows AND >= min_grid_steps grid
    steps (so the parallel grid axis can be split across v7x's two TCs)."""
    cap = max(1, target_rows // max(L, 1))
    best = 1
    for c in range(1, B + 1):
        if B % c != 0 or c > cap:
            continue
        if B >= min_grid_steps and (B // c) < min_grid_steps:
            continue
        best = c
    return best


def _vmem_limit_bytes(frac=0.75, fallback=48 * 1024 * 1024):
    """~25% headroom below physical per-core VMEM (v7x: 64 MiB/TC -> 48 MiB;
    v5e/v6e: 128 MiB -> 96 MiB). Falls back to a v7x-safe 48 MiB."""
    try:
        cap = getattr(pltpu.get_tpu_info(), "vmem_capacity_bytes", None)
        if cap:
            return int(cap) * 3 // 4 if frac == 0.75 else int(cap * frac)
    except Exception:
        pass
    return fallback


def mab_forward(X, Y, params, num_heads, *, target_rows=2048,
                compute_dtype=jnp.bfloat16):
    """X: (B, Lq, Qdim), Y: (B, Lk, Kdim). Returns (B, Lq, Vdim) in X.dtype."""
    B, Lq, Qdim = X.shape
    By, Lk, Kdim = Y.shape
    assert By == B
    Vdim = params["wq"].shape[0]
    assert Vdim % num_heads == 0
    Vp = _round_up(Vdim, 128)          # lane-dense output width
    Qp = _round_up(Qdim, 128)          # lane-dense contraction dims
    Kp = _round_up(Kdim, 128)

    Bt = _pick_batch_tile(B, max(Lq, Lk), target_rows)
    # block second-minor dims must be multiples of 8 unless the block spans the
    # full array; fall back to a single grid step otherwise.
    if (Bt * Lq) % 8 != 0 or (Bt * Lk) % 8 != 0:
        Bt = B
    grid = (B // Bt,)

    # --- weight glue (wrapper-side layout plumbing, one-time & outside kernel) ---
    wq_p = jnp.pad(params["wq"].T, ((0, Qp - Qdim), (0, 0))).astype(compute_dtype)   # (Qp, Vdim)
    wkv = jnp.concatenate([params["wk"].T, params["wv"].T], axis=1)                  # (Kdim, 2*Vdim)
    wkv_p = jnp.pad(wkv, ((0, Kp - Kdim), (0, 0))).astype(compute_dtype)             # (Kp, 2*Vdim)
    wo_p = jnp.pad(params["wo"].T, ((0, 0), (0, Vp - Vdim))).astype(compute_dtype)   # (Vdim, Vp)
    bq = params["bq"].reshape(1, Vdim).astype(jnp.float32)
    bkv = jnp.concatenate([params["bk"], params["bv"]]).reshape(1, 2 * Vdim).astype(jnp.float32)
    bo = jnp.pad(params["bo"], (0, Vp - Vdim)).reshape(1, Vp).astype(jnp.float32)

    # flatten (batch, seq) into matmul rows; zero-pad contraction lanes; bf16 cast
    X2 = jnp.pad(X.reshape(B * Lq, Qdim), ((0, 0), (0, Qp - Qdim))).astype(compute_dtype)
    Y2 = jnp.pad(Y.reshape(B * Lk, Kdim), ((0, 0), (0, Kp - Kdim))).astype(compute_dtype)

    kernel = functools.partial(mab_kernel, num_heads=num_heads,
                               batch_tile=Bt, lq=Lq, lk=Lk)

    def full2(shape):
        return pl.BlockSpec(shape, lambda i: (0, 0))

    out2 = pl.pallas_call(
        kernel,
        out_shape=jax.ShapeDtypeStruct((B * Lq, Vp), X.dtype),
        grid_spec=pltpu.PrefetchScalarGridSpec(
            num_scalar_prefetch=0,
            grid=grid,
            in_specs=[
                pl.BlockSpec((Bt * Lq, Qp), lambda i: (i, 0)),     # X row slab
                pl.BlockSpec((Bt * Lk, Kp), lambda i: (i, 0)),     # Y row slab
                full2((Qp, Vdim)), full2((1, Vdim)),               # Wq, bq
                full2((Kp, 2 * Vdim)), full2((1, 2 * Vdim)),       # Wkv, bkv
                full2((Vdim, Vp)), full2((1, Vp)),                 # Wo (unsplit), bo
            ],
            out_specs=pl.BlockSpec((Bt * Lq, Vp), lambda i: (i, 0)),
            scratch_shapes=[pltpu.VMEM((Bt * Lq, Vdim), jnp.float32)],
        ),
        compiler_params=pltpu.CompilerParams(
            dimension_semantics=("parallel",),
            vmem_limit_bytes=_vmem_limit_bytes(),
        ),
    )(X2, Y2, wq_p, bq, wkv_p, bkv, wo_p, bo)

    return out2.reshape(B, Lq, Vp)[:, :, :Vdim]


def mab_reference(X, Y, params, num_heads):
    """Pure-JAX f32 reference mirroring the PyTorch forward exactly."""
    Vdim = params["wq"].shape[0]
    d = Vdim // num_heads
    Q = X @ params["wq"].T + params["bq"]
    K = Y @ params["wk"].T + params["bk"]
    V = Y @ params["wv"].T + params["bv"]
    B = Q.shape[0]
    # split along feature dim, concat along batch dim (torch semantics)
    Qs = jnp.concatenate([Q[:, :, h * d:(h + 1) * d] for h in range(num_heads)], 0)
    Ks = jnp.concatenate([K[:, :, h * d:(h + 1) * d] for h in range(num_heads)], 0)
    Vs = jnp.concatenate([V[:, :, h * d:(h + 1) * d] for h in range(num_heads)], 0)
    attn = jax.nn.softmax(jnp.einsum("bqd,bkd->bqk", Qs, Ks) / math.sqrt(d), axis=-1)
    O = Qs + jnp.einsum("bqk,bkd->bqd", attn, Vs)
    O = jnp.concatenate([O[h * B:(h + 1) * B] for h in range(num_heads)], 2)
    return O @ params["wo"].T + params["bo"]


def init_params(key, Qdim, Kdim, Vdim):
    """Deterministic torch.nn.Linear-style init: U(-1/sqrt(fan_in), 1/sqrt(fan_in))."""
    ks = jax.random.split(key, 8)

    def lin(kw, kb, out_dim, in_dim):
        bound = 1.0 / math.sqrt(in_dim)
        w = jax.random.uniform(kw, (out_dim, in_dim), jnp.float32, -bound, bound)
        b = jax.random.uniform(kb, (out_dim,), jnp.float32, -bound, bound)
        return w, b

    wq, bq = lin(ks[0], ks[1], Vdim, Qdim)
    wk, bk = lin(ks[2], ks[3], Vdim, Kdim)
    wv, bv = lin(ks[4], ks[5], Vdim, Kdim)
    wo, bo = lin(ks[6], ks[7], Vdim, Vdim)
    return dict(wq=wq, bq=bq, wk=wk, bk=bk, wv=wv, bv=bv, wo=wo, bo=bo)


if __name__ == "__main__":
    B, Lq, Lk = 2, 8, 8
    Qdim, Kdim, Vdim, num_heads = 16, 16, 32, 4

    key = jax.random.PRNGKey(0)
    kx, ky, kp = jax.random.split(key, 3)
    X = jax.random.normal(kx, (B, Lq, Qdim), jnp.float32)
    Y = jax.random.normal(ky, (B, Lk, Kdim), jnp.float32)
    params = init_params(kp, Qdim, Kdim, Vdim)

    out = mab_forward(X, Y, params, num_heads)
    out = jax.block_until_ready(out)

    ref = mab_reference(X, Y, params, num_heads)
    assert out.shape == (B, Lq, Vdim), out.shape
    # Tolerance accounts for bf16 matmul operands (per the perf review) and the
    # EUP approximate-reciprocal softmax denominator; structural errors would
    # be orders of magnitude larger than 5e-2.
    err = jnp.max(jnp.abs(out - ref))
    assert jnp.allclose(out, ref, atol=5e-2, rtol=5e-2), f"max abs err {err}"

    print("KERNEL_OK")
</pallas_src>

<mosaic_0001>
module attributes {stable_mosaic.version = 11 : i64} {
  func.func @mab_kernel(%arg0: i32, %arg1: memref<8x128xbf16, #tpu.memory_space<vmem>>, %arg2: memref<8x128xbf16, #tpu.memory_space<vmem>>, %arg3: memref<128x32xbf16, #tpu.memory_space<vmem>>, %arg4: memref<1x32xf32, #tpu.memory_space<vmem>>, %arg5: memref<128x64xbf16, #tpu.memory_space<vmem>>, %arg6: memref<1x64xf32, #tpu.memory_space<vmem>>, %arg7: memref<32x128xbf16, #tpu.memory_space<vmem>>, %arg8: memref<1x128xf32, #tpu.memory_space<vmem>>, %arg9: memref<8x128xf32, #tpu.memory_space<vmem>>, %arg10: memref<8x32xf32, #tpu.memory_space<vmem>>) attributes {dimension_semantics = [#tpu.dimension_semantics<parallel>], iteration_bounds = array<i64: 2>, scalar_prefetch = 0 : i64, scratch_operands = 1 : i64, tpu.core_type = #tpu.core_type<tc>, window_params = [{transform_indices = @transform_0, window_bounds = array<i64: 8, 128>}, {transform_indices = @transform_1, window_bounds = array<i64: 8, 128>}, {pipeline_mode = #tpu.pipeline_mode<synchronous>, transform_indices = @transform_2, window_bounds = array<i64: 128, 32>}, {pipeline_mode = #tpu.pipeline_mode<synchronous>, transform_indices = @transform_3, window_bounds = array<i64: 1, 32>}, {pipeline_mode = #tpu.pipeline_mode<synchronous>, transform_indices = @transform_4, window_bounds = array<i64: 128, 64>}, {pipeline_mode = #tpu.pipeline_mode<synchronous>, transform_indices = @transform_5, window_bounds = array<i64: 1, 64>}, {pipeline_mode = #tpu.pipeline_mode<synchronous>, transform_indices = @transform_6, window_bounds = array<i64: 32, 128>}, {pipeline_mode = #tpu.pipeline_mode<synchronous>, transform_indices = @transform_7, window_bounds = array<i64: 1, 128>}, {transform_indices = @transform_8, window_bounds = array<i64: 8, 128>}]} {
    %c0 = arith.constant 0 : index
    %c0_0 = arith.constant 0 : index
    %0 = vector.load %arg1[%c0, %c0_0] : memref<8x128xbf16, #tpu.memory_space<vmem>>, vector<8x128xbf16>
    %c0_1 = arith.constant 0 : index
    %c0_2 = arith.constant 0 : index
    %1 = vector.load %arg2[%c0_1, %c0_2] : memref<8x128xbf16, #tpu.memory_space<vmem>>, vector<8x128xbf16>
    %c0_3 = arith.constant 0 : index
    %c0_4 = arith.constant 0 : index
    %2 = vector.load %arg3[%c0_3, %c0_4] : memref<128x32xbf16, #tpu.memory_space<vmem>>, vector<128x32xbf16>
    %cst = arith.constant dense<0.000000e+00> : vector<8x32xf32>
    %3 = tpu.matmul %0, %2, %cst {dimension_numbers = #tpu.dot_dimension_numbers<[1], [0], [0], [1], [0, 0, 1, 1], [], []>} : vector<8x128xbf16>, vector<128x32xbf16>, vector<8x32xf32> -> vector<8x32xf32>
    %c0_5 = arith.constant 0 : index
    %c0_6 = arith.constant 0 : index
    %4 = vector.load %arg4[%c0_5, %c0_6] : memref<1x32xf32, #tpu.memory_space<vmem>>, vector<1x32xf32>
    %5 = vector.broadcast %4 : vector<1x32xf32> to vector<8x32xf32>
    %6 = arith.addf %3, %5 : vector<8x32xf32>
    %c0_7 = arith.constant 0 : index
    %c0_8 = arith.constant 0 : index
    %7 = vector.load %arg5[%c0_7, %c0_8] : memref<128x64xbf16, #tpu.memory_space<vmem>>, vector<128x64xbf16>
    %cst_9 = arith.constant dense<0.000000e+00> : vector<8x64xf32>
    %8 = tpu.matmul %1, %7, %cst_9 {dimension_numbers = #tpu.dot_dimension_numbers<[1], [0], [0], [1], [0, 0, 1, 1], [], []>} : vector<8x128xbf16>, vector<128x64xbf16>, vector<8x64xf32> -> vector<8x64xf32>
    %c0_10 = arith.constant 0 : index
    %c0_11 = arith.constant 0 : index
    %9 = vector.load %arg6[%c0_10, %c0_11] : memref<1x64xf32, #tpu.memory_space<vmem>>, vector<1x64xf32>
    %10 = vector.broadcast %9 : vector<1x64xf32> to vector<8x64xf32>
    %11 = arith.addf %8, %10 : vector<8x64xf32>
    %12 = vector.shape_cast %6 : vector<8x32xf32> to vector<1x8x32xf32>
    %13 = vector.shape_cast %11 : vector<8x64xf32> to vector<1x8x64xf32>
    %c0_12 = arith.constant 0 : index
    %c0_13 = arith.constant 0 : index
    %14 = vector.load %arg10[%c0_12, %c0_13] : memref<8x32xf32, #tpu.memory_space<vmem>>, vector<8x32xf32>
    tpu.vector_store %arg10[%c0_12, %c0_13], %6 {strides = array<i32>} : memref<8x32xf32, #tpu.memory_space<vmem>>, vector<8x32xf32>,
    %15 = vector.extract_strided_slice %12 {offsets = [0, 0, 0], sizes = [1, 8, 8], strides = [1, 1, 1]} : vector<1x8x32xf32> to vector<1x8x8xf32>
    %16 = vector.extract_strided_slice %13 {offsets = [0, 0, 0], sizes = [1, 8, 8], strides = [1, 1, 1]} : vector<1x8x64xf32> to vector<1x8x8xf32>
    %17 = vector.extract_strided_slice %13 {offsets = [0, 0, 32], sizes = [1, 8, 8], strides = [1, 1, 1]} : vector<1x8x64xf32> to vector<1x8x8xf32>
    %18 = arith.truncf %15 : vector<1x8x8xf32> to vector<1x8x8xbf16>
    %19 = arith.truncf %16 : vector<1x8x8xf32> to vector<1x8x8xbf16>
    "tpu.trace_start"() <{level = 10 : i32, message = "bqd,bkd->bqk"}> : () -> ()
    %cst_14 = arith.constant dense<0.000000e+00> : vector<1x8x8xf32>
    %20 = tpu.matmul %18, %19, %cst_14 {dimension_numbers = #tpu.dot_dimension_numbers<[2], [2], [1], [1], [0, 0, 0, 1, 1, 1], [0], [0]>} : vector<1x8x8xbf16>, vector<1x8x8xbf16>, vector<1x8x8xf32> -> vector<1x8x8xf32>
    "tpu.trace_stop"() : () -> ()
    %cst_15 = arith.constant 0.353553385 : f32
    %21 = vector.broadcast %cst_15 : f32 to vector<1x8x8xf32>
    %22 = arith.mulf %20, %21 : vector<1x8x8xf32>
    %cst_16 = arith.constant dense<0xFF800000> : vector<1x8xf32>
    %23 = vector.multi_reduction <maximumf>, %22, %cst_16 [2] : vector<1x8x8xf32> to vector<1x8xf32>
    %24 = vector.shape_cast %23 : vector<1x8xf32> to vector<1x8x1xf32>
    %25 = vector.broadcast %24 : vector<1x8x1xf32> to vector<1x8x8xf32>
    %26 = arith.subf %22, %25 : vector<1x8x8xf32>
    %27 = math.exp %26 : vector<1x8x8xf32>
    %cst_17 = arith.constant dense<0.000000e+00> : vector<1x8xf32>
    %28 = vector.multi_reduction <add>, %27, %cst_17 [2] : vector<1x8x8xf32> to vector<1x8xf32>
    %29 = vector.shape_cast %28 : vector<1x8xf32> to vector<1x8x1xf32>
    %30 = tpu.reciprocal %29 {approx = true} : vector<1x8x1xf32> -> vector<1x8x1xf32>
    %31 = vector.broadcast %30 : vector<1x8x1xf32> to vector<1x8x8xf32>
    %32 = arith.mulf %27, %31 : vector<1x8x8xf32>
    %33 = arith.truncf %32 : vector<1x8x8xf32> to vector<1x8x8xbf16>
    %34 = arith.truncf %17 : vector<1x8x8xf32> to vector<1x8x8xbf16>
    "tpu.trace_start"() <{level = 10 : i32, message = "bqk,bkd->bqd"}> : () -> ()
    %cst_18 = arith.constant dense<0.000000e+00> : vector<1x8x8xf32>
    %35 = tpu.matmul %33, %34, %cst_18 {dimension_numbers = #tpu.dot_dimension_numbers<[2], [1], [1], [2], [0, 0, 0, 1, 1, 2], [0], [0]>} : vector<1x8x8xbf16>, vector<1x8x8xbf16>, vector<1x8x8xf32> -> vector<1x8x8xf32>
    "tpu.trace_stop"() : () -> ()
    %c0_19 = arith.constant 0 : index
    %c0_20 = arith.constant 0 : index
    %36 = vector.load %arg10[%c0_19, %c0_20] : memref<8x32xf32, #tpu.memory_space<vmem>>, vector<8x8xf32>
    %37 = vector.shape_cast %35 : vector<1x8x8xf32> to vector<8x8xf32>
    %38 = arith.addf %36, %37 : vector<8x8xf32>
    %c0_21 = arith.constant 0 : index
    %c0_22 = arith.constant 0 : index
    %39 = vector.load %arg10[%c0_21, %c0_22] : memref<8x32xf32, #tpu.memory_space<vmem>>, vector<8x8xf32>
    tpu.vector_store %arg10[%c0_21, %c0_22], %38 {strides = array<i32>} : memref<8x32xf32, #tpu.memory_space<vmem>>, vector<8x8xf32>,
    %40 = vector.extract_strided_slice %12 {offsets = [0, 0, 8], sizes = [1, 8, 8], strides = [1, 1, 1]} : vector<1x8x32xf32> to vector<1x8x8xf32>
    %41 = vector.extract_strided_slice %13 {offsets = [0, 0, 8], sizes = [1, 8, 8], strides = [1, 1, 1]} : vector<1x8x64xf32> to vector<1x8x8xf32>
    %42 = vector.extract_strided_slice %13 {offsets = [0, 0, 40], sizes = [1, 8, 8], strides = [1, 1, 1]} : vector<1x8x64xf32> to vector<1x8x8xf32>
    %43 = arith.truncf %40 : vector<1x8x8xf32> to vector<1x8x8xbf16>
    %44 = arith.truncf %41 : vector<1x8x8xf32> to vector<1x8x8xbf16>
    "tpu.trace_start"() <{level = 10 : i32, message = "bqd,bkd->bqk"}> : () -> ()
    %cst_23 = arith.constant dense<0.000000e+00> : vector<1x8x8xf32>
    %45 = tpu.matmul %43, %44, %cst_23 {dimension_numbers = #tpu.dot_dimension_numbers<[2], [2], [1], [1], [0, 0, 0, 1, 1, 1], [0], [0]>} : vector<1x8x8xbf16>, vector<1x8x8xbf16>, vector<1x8x8xf32> -> vector<1x8x8xf32>
    "tpu.trace_stop"() : () -> ()
    %cst_24 = arith.constant 0.353553385 : f32
    %46 = vector.broadcast %cst_24 : f32 to vector<1x8x8xf32>
    %47 = arith.mulf %45, %46 : vector<1x8x8xf32>
    %cst_25 = arith.constant dense<0xFF800000> : vector<1x8xf32>
    %48 = vector.multi_reduction <maximumf>, %47, %cst_25 [2] : vector<1x8x8xf32> to vector<1x8xf32>
    %49 = vector.shape_cast %48 : vector<1x8xf32> to vector<1x8x1xf32>
    %50 = vector.broadcast %49 : vector<1x8x1xf32> to vector<1x8x8xf32>
    %51 = arith.subf %47, %50 : vector<1x8x8xf32>
    %52 = math.exp %51 : vector<1x8x8xf32>
    %cst_26 = arith.constant dense<0.000000e+00> : vector<1x8xf32>
    %53 = vector.multi_reduction <add>, %52, %cst_26 [2] : vector<1x8x8xf32> to vector<1x8xf32>
    %54 = vector.shape_cast %53 : vector<1x8xf32> to vector<1x8x1xf32>
    %55 = tpu.reciprocal %54 {approx = true} : vector<1x8x1xf32> -> vector<1x8x1xf32>
    %56 = vector.broadcast %55 : vector<1x8x1xf32> to vector<1x8x8xf32>
    %57 = arith.mulf %52, %56 : vector<1x8x8xf32>
    %58 = arith.truncf %57 : vector<1x8x8xf32> to vector<1x8x8xbf16>
    %59 = arith.truncf %42 : vector<1x8x8xf32> to vector<1x8x8xbf16>
    "tpu.trace_start"() <{level = 10 : i32, message = "bqk,bkd->bqd"}> : () -> ()
    %cst_27 = arith.constant dense<0.000000e+00> : vector<1x8x8xf32>
    %60 = tpu.matmul %58, %59, %cst_27 {dimension_numbers = #tpu.dot_dimension_numbers<[2], [1], [1], [2], [0, 0, 0, 1, 1, 2], [0], [0]>} : vector<1x8x8xbf16>, vector<1x8x8xbf16>, vector<1x8x8xf32> -> vector<1x8x8xf32>
    "tpu.trace_stop"() : () -> ()
    %c0_28 = arith.constant 0 : index
    %c8 = arith.constant 8 : index
    %61 = vector.load %arg10[%c0_28, %c8] : memref<8x32xf32, #tpu.memory_space<vmem>>, vector<8x8xf32>
    %62 = vector.shape_cast %60 : vector<1x8x8xf32> to vector<8x8xf32>
    %63 = arith.addf %61, %62 : vector<8x8xf32>
    %c0_29 = arith.constant 0 : index
    %c8_30 = arith.constant 8 : index
    %64 = vector.load %arg10[%c0_29, %c8_30] : memref<8x32xf32, #tpu.memory_space<vmem>>, vector<8x8xf32>
    tpu.vector_store %arg10[%c0_29, %c8_30], %63 {strides = array<i32>} : memref<8x32xf32, #tpu.memory_space<vmem>>, vector<8x8xf32>,
    %65 = vector.extract_strided_slice %12 {offsets = [0, 0, 16], sizes = [1, 8, 8], strides = [1, 1, 1]} : vector<1x8x32xf32> to vector<1x8x8xf32>
    %66 = vector.extract_strided_slice %13 {offsets = [0, 0, 16], sizes = [1, 8, 8], strides = [1, 1, 1]} : vector<1x8x64xf32> to vector<1x8x8xf32>
    %67 = vector.extract_strided_slice %13 {offsets = [0, 0, 48], sizes = [1, 8, 8], strides = [1, 1, 1]} : vector<1x8x64xf32> to vector<1x8x8xf32>
    %68 = arith.truncf %65 : vector<1x8x8xf32> to vector<1x8x8xbf16>
    %69 = arith.truncf %66 : vector<1x8x8xf32> to vector<1x8x8xbf16>
    "tpu.trace_start"() <{level = 10 : i32, message = "bqd,bkd->bqk"}> : () -> ()
    %cst_31 = arith.constant dense<0.000000e+00> : vector<1x8x8xf32>
    %70 = tpu.matmul %68, %69, %cst_31 {dimension_numbers = #tpu.dot_dimension_numbers<[2], [2], [1], [1], [0, 0, 0, 1, 1, 1], [0], [0]>} : vector<1x8x8xbf16>, vector<1x8x8xbf16>, vector<1x8x8xf32> -> vector<1x8x8xf32>
    "tpu.trace_stop"() : () -> ()
    %cst_32 = arith.constant 0.353553385 : f32
    %71 = vector.broadcast %cst_32 : f32 to vector<1x8x8xf32>
    %72 = arith.mulf %70, %71 : vector<1x8x8xf32>
    %cst_33 = arith.constant dense<0xFF800000> : vector<1x8xf32>
    %73 = vector.multi_reduction <maximumf>, %72, %cst_33 [2] : vector<1x8x8xf32> to vector<1x8xf32>
    %74 = vector.shape_cast %73 : vector<1x8xf32> to vector<1x8x1xf32>
    %75 = vector.broadcast %74 : vector<1x8x1xf32> to vector<1x8x8xf32>
    %76 = arith.subf %72, %75 : vector<1x8x8xf32>
    %77 = math.exp %76 : vector<1x8x8xf32>
    %cst_34 = arith.constant dense<0.000000e+00> : vector<1x8xf32>
    %78 = vector.multi_reduction <add>, %77, %cst_34 [2] : vector<1x8x8xf32> to vector<1x8xf32>
    %79 = vector.shape_cast %78 : vector<1x8xf32> to vector<1x8x1xf32>
    %80 = tpu.reciprocal %79 {approx = true} : vector<1x8x1xf32> -> vector<1x8x1xf32>
    %81 = vector.broadcast %80 : vector<1x8x1xf32> to vector<1x8x8xf32>
    %82 = arith.mulf %77, %81 : vector<1x8x8xf32>
    %83 = arith.truncf %82 : vector<1x8x8xf32> to vector<1x8x8xbf16>
    %84 = arith.truncf %67 : vector<1x8x8xf32> to vector<1x8x8xbf16>
    "tpu.trace_start"() <{level = 10 : i32, message = "bqk,bkd->bqd"}> : () -> ()
    %cst_35 = arith.constant dense<0.000000e+00> : vector<1x8x8xf32>
    %85 = tpu.matmul %83, %84, %cst_35 {dimension_numbers = #tpu.dot_dimension_numbers<[2], [1], [1], [2], [0, 0, 0, 1, 1, 2], [0], [0]>} : vector<1x8x8xbf16>, vector<1x8x8xbf16>, vector<1x8x8xf32> -> vector<1x8x8xf32>
    "tpu.trace_stop"() : () -> ()
    %c0_36 = arith.constant 0 : index
    %c16 = arith.constant 16 : index
    %86 = vector.load %arg10[%c0_36, %c16] : memref<8x32xf32, #tpu.memory_space<vmem>>, vector<8x8xf32>
    %87 = vector.shape_cast %85 : vector<1x8x8xf32> to vector<8x8xf32>
    %88 = arith.addf %86, %87 : vector<8x8xf32>
    %c0_37 = arith.constant 0 : index
    %c16_38 = arith.constant 16 : index
    %89 = vector.load %arg10[%c0_37, %c16_38] : memref<8x32xf32, #tpu.memory_space<vmem>>, vector<8x8xf32>
    tpu.vector_store %arg10[%c0_37, %c16_38], %88 {strides = array<i32>} : memref<8x32xf32, #tpu.memory_space<vmem>>, vector<8x8xf32>,
    %90 = vector.extract_strided_slice %12 {offsets = [0, 0, 24], sizes = [1, 8, 8], strides = [1, 1, 1]} : vector<1x8x32xf32> to vector<1x8x8xf32>
    %91 = vector.extract_strided_slice %13 {offsets = [0, 0, 24], sizes = [1, 8, 8], strides = [1, 1, 1]} : vector<1x8x64xf32> to vector<1x8x8xf32>
    %92 = vector.extract_strided_slice %13 {offsets = [0, 0, 56], sizes = [1, 8, 8], strides = [1, 1, 1]} : vector<1x8x64xf32> to vector<1x8x8xf32>
    %93 = arith.truncf %90 : vector<1x8x8xf32> to vector<1x8x8xbf16>
    %94 = arith.truncf %91 : vector<1x8x8xf32> to vector<1x8x8xbf16>
    "tpu.trace_start"() <{level = 10 : i32, message = "bqd,bkd->bqk"}> : () -> ()
    %cst_39 = arith.constant dense<0.000000e+00> : vector<1x8x8xf32>
    %95 = tpu.matmul %93, %94, %cst_39 {dimension_numbers = #tpu.dot_dimension_numbers<[2], [2], [1], [1], [0, 0, 0, 1, 1, 1], [0], [0]>} : vector<1x8x8xbf16>, vector<1x8x8xbf16>, vector<1x8x8xf32> -> vector<1x8x8xf32>
    "tpu.trace_stop"() : () -> ()
    %cst_40 = arith.constant 0.353553385 : f32
    %96 = vector.broadcast %cst_40 : f32 to vector<1x8x8xf32>
    %97 = arith.mulf %95, %96 : vector<1x8x8xf32>
    %cst_41 = arith.constant dense<0xFF800000> : vector<1x8xf32>
    %98 = vector.multi_reduction <maximumf>, %97, %cst_41 [2] : vector<1x8x8xf32> to vector<1x8xf32>
    %99 = vector.shape_cast %98 : vector<1x8xf32> to vector<1x8x1xf32>
    %100 = vector.broadcast %99 : vector<1x8x1xf32> to vector<1x8x8xf32>
    %101 = arith.subf %97, %100 : vector<1x8x8xf32>
    %102 = math.exp %101 : vector<1x8x8xf32>
    %cst_42 = arith.constant dense<0.000000e+00> : vector<1x8xf32>
    %103 = vector.multi_reduction <add>, %102, %cst_42 [2] : vector<1x8x8xf32> to vector<1x8xf32>
    %104 = vector.shape_cast %103 : vector<1x8xf32> to vector<1x8x1xf32>
    %105 = tpu.reciprocal %104 {approx = true} : vector<1x8x1xf32> -> vector<1x8x1xf32>
    %106 = vector.broadcast %105 : vector<1x8x1xf32> to vector<1x8x8xf32>
    %107 = arith.mulf %102, %106 : vector<1x8x8xf32>
    %108 = arith.truncf %107 : vector<1x8x8xf32> to vector<1x8x8xbf16>
    %109 = arith.truncf %92 : vector<1x8x8xf32> to vector<1x8x8xbf16>
    "tpu.trace_start"() <{level = 10 : i32, message = "bqk,bkd->bqd"}> : () -> ()
    %cst_43 = arith.constant dense<0.000000e+00> : vector<1x8x8xf32>
    %110 = tpu.matmul %108, %109, %cst_43 {dimension_numbers = #tpu.dot_dimension_numbers<[2], [1], [1], [2], [0, 0, 0, 1, 1, 2], [0], [0]>} : vector<1x8x8xbf16>, vector<1x8x8xbf16>, vector<1x8x8xf32> -> vector<1x8x8xf32>
    "tpu.trace_stop"() : () -> ()
    %c0_44 = arith.constant 0 : index
    %c24 = arith.constant 24 : index
    %111 = vector.load %arg10[%c0_44, %c24] : memref<8x32xf32, #tpu.memory_space<vmem>>, vector<8x8xf32>
    %112 = vector.shape_cast %110 : vector<1x8x8xf32> to vector<8x8xf32>
    %113 = arith.addf %111, %112 : vector<8x8xf32>
    %c0_45 = arith.constant 0 : index
    %c24_46 = arith.constant 24 : index
    %114 = vector.load %arg10[%c0_45, %c24_46] : memref<8x32xf32, #tpu.memory_space<vmem>>, vector<8x8xf32>
    tpu.vector_store %arg10[%c0_45, %c24_46], %113 {strides = array<i32>} : memref<8x32xf32, #tpu.memory_space<vmem>>, vector<8x8xf32>,
    %c0_47 = arith.constant 0 : index
    %c0_48 = arith.constant 0 : index
    %115 = vector.load %arg10[%c0_47, %c0_48] : memref<8x32xf32, #tpu.memory_space<vmem>>, vector<8x32xf32>
    %116 = arith.truncf %115 : vector<8x32xf32> to vector<8x32xbf16>
    %c0_49 = arith.constant 0 : index
    %c0_50 = arith.constant 0 : index
    %117 = vector.load %arg7[%c0_49, %c0_50] : memref<32x128xbf16, #tpu.memory_space<vmem>>, vector<32x128xbf16>
    %cst_51 = arith.constant dense<0.000000e+00> : vector<8x128xf32>
    %118 = tpu.matmul %116, %117, %cst_51 {dimension_numbers = #tpu.dot_dimension_numbers<[1], [0], [0], [1], [0, 0, 1, 1], [], []>} : vector<8x32xbf16>, vector<32x128xbf16>, vector<8x128xf32> -> vector<8x128xf32>
    %c0_52 = arith.constant 0 : index
    %c0_53 = arith.constant 0 : index
    %119 = vector.load %arg8[%c0_52, %c0_53] : memref<1x128xf32, #tpu.memory_space<vmem>>, vector<1x128xf32>
    %120 = vector.broadcast %119 : vector<1x128xf32> to vector<8x128xf32>
    %121 = arith.addf %118, %120 : vector<8x128xf32>
    %c0_54 = arith.constant 0 : index
    %c0_55 = arith.constant 0 : index
    %122 = vector.load %arg9[%c0_54, %c0_55] : memref<8x128xf32, #tpu.memory_space<vmem>>, vector<8x128xf32>
    tpu.vector_store %arg9[%c0_54, %c0_55], %121 {strides = array<i32>} : memref<8x128xf32, #tpu.memory_space<vmem>>, vector<8x128xf32>,
    return
  }
  func.func @transform_0(%arg0: i32) -> (i32, i32) {
    %c0_i32 = arith.constant 0 : i32
    %c0_i32_0 = arith.constant 0 : i32
    return %arg0, %c0_i32 : i32, i32
  }
  func.func @transform_1(%arg0: i32) -> (i32, i32) {
    %c0_i32 = arith.constant 0 : i32
    %c0_i32_0 = arith.constant 0 : i32
    return %arg0, %c0_i32 : i32, i32
  }
  func.func @transform_2(%arg0: i32) -> (i32, i32) {
    %c0_i32 = arith.constant 0 : i32
    %c0_i32_0 = arith.constant 0 : i32
    %c0_i32_1 = arith.constant 0 : i32
    return %c0_i32, %c0_i32_0 : i32, i32
  }
  func.func @transform_3(%arg0: i32) -> (i32, i32) {
    %c0_i32 = arith.constant 0 : i32
    %c0_i32_0 = arith.constant 0 : i32
    %c0_i32_1 = arith.constant 0 : i32
    return %c0_i32, %c0_i32_0 : i32, i32
  }
  func.func @transform_4(%arg0: i32) -> (i32, i32) {
    %c0_i32 = arith.constant 0 : i32
    %c0_i32_0 = arith.constant 0 : i32
    %c0_i32_1 = arith.constant 0 : i32
    return %c0_i32, %c0_i32_0 : i32, i32
  }
  func.func @transform_5(%arg0: i32) -> (i32, i32) {
    %c0_i32 = arith.constant 0 : i32
    %c0_i32_0 = arith.constant 0 : i32
    %c0_i32_1 = arith.constant 0 : i32
    return %c0_i32, %c0_i32_0 : i32, i32
  }
  func.func @transform_6(%arg0: i32) -> (i32, i32) {
    %c0_i32 = arith.constant 0 : i32
    %c0_i32_0 = arith.constant 0 : i32
    %c0_i32_1 = arith.constant 0 : i32
    return %c0_i32, %c0_i32_0 : i32, i32
  }
  func.func @transform_7(%arg0: i32) -> (i32, i32) {
    %c0_i32 = arith.constant 0 : i32
    %c0_i32_0 = arith.constant 0 : i32
    %c0_i32_1 = arith.constant 0 : i32
    return %c0_i32, %c0_i32_0 : i32, i32
  }
  func.func @transform_8(%arg0: i32) -> (i32, i32) {
    %c0_i32 = arith.constant 0 : i32
    %c0_i32_0 = arith.constant 0 : i32
    return %arg0, %c0_i32 : i32, i32
  }
}

</mosaic_0001>

<bundles_post_ra>
// kernel: tpu_custom_call.1
= control target key start
LH: loop header
LB: loop body
LE: loop exit
PB: predicated region body
PF: predicated region fallthrough
CT: control target
= control target key end

     0   :  { %13 = vsyncpa [#allocation4], 0  ;;  %s1358_s0 = inlined_call_operand.vmem [shape: bf16[16,128], index: 0, kind: input, shape index: {}]   ;;  %s1359_s1 = inlined_call_operand.vmem [shape: bf16[16,128], index: 1, kind: input, shape index: {}]   ;;  %s1360_s2 = inlined_call_operand.vmem [shape: bf16[128,32], index: 2, kind: input, shape index: {}]   ;;  %s1361_s3 = inlined_call_operand.vmem [shape: f32[1,32], index: 3, kind: input, shape index: {}]   ;;  %s1362_s4 = inlined_call_operand.vmem [shape: bf16[128,64], index: 4, kind: input, shape index: {}]   ;;  %s1363_s5 = inlined_call_operand.vmem [shape: f32[1,64], index: 5, kind: input, shape index: {}]   ;;  %s1364_s6 = inlined_call_operand.vmem [shape: bf16[32,128], index: 6, kind: input, shape index: {}]   ;;  %s1365_s7 = inlined_call_operand.vmem [shape: f32[1,128], index: 7, kind: input, shape index: {}]   ;;  %s1366_s8 = inlined_call_operand.hbm [shape: f32[16,128], index: 8, kind: output, shape index: {}]  }
   0x1   :  { %15 = vsyncpa [#allocation4 + $0x1], 0  ;;  %s1169_s27 = smov 0   ;;  %s1171_s28 = smov 0  }
   0x2   :  { %s1173_s29 = smov 0   ;;  %s1175_s30 = smov 0  }
   0x3 LB: > { %s1190_s9 = sadd.s32 4294967295, %s1112_s30   ;;  %s872_s10 = sadd.s32 4294967294, %s1112_s30   ;;  %s1112_s30 = sphi %s1175_s30, %s1372_s30   ;;  %s1108_s29 = sphi %s1173_s29, %s1371_s29   ;;  %s1104_s28 = sphi %s1171_s28, %s1370_s28   ;;  %s1100_s27 = sphi %s1169_s27, %s1369_s27  }
   0x4   : > { %s1194_s11 = sadd.s32 1, %s1112_s30   ;;  %s206_s12 = sadd.s32 1, %s1108_s29 }
   0x5   : > { %s203_s13 = ssub.s32 %s1112_s30, %s1194_s11  ;;  %p216_p0 = scmp.ne.s32.totalorder %s1108_s29, %s1104_s28 }
   0x6   : > { %p204_p1 = scmp.eq.s32.totalorder %s203_s13, 0  ;;  %p217_p2 = scmp.eq.s32.totalorder %s1190_s9, 1 }
   0x7   : > { %p222_p3 = scmp.ne.s32.totalorder %s1104_s28, %s1100_s27  ;;  %p223_p4 = scmp.eq.s32.totalorder %s872_s10, 1 }
   0x8   : > { %s1205_s14 = scalar_select %p204_p1, %s1108_s29, %s206_s12  }
   0x9   : > { %p1207_p5 = por %p217_p2, %p216_p0  ;;  %p1211_p6 = por %p223_p4, %p222_p3 }
   0xa   : > { %p875_p7 = scmp.ge.s32.totalorder %s1112_s30, 1  ;;  %p273_p8 = scmp.lt.s32.totalorder %s1112_s30, 3 }
   0xc   : > { %p274_p9 = pnand %p875_p7, %p273_p8 }
   0xd   : > { %p310_p10 = scmp.lt.s32.totalorder (!%p274_p9), %s1190_s9, 1  ;;  %s1115_s23 = smov (!%p274_p9), 120  }
   0xe   : > { %277 = sbr.rel (%p274_p9) target bundleno = 1411 (0x583), region = 52  ;;  %s1116_s24 = smov (!%p274_p9), 112  }
   0xf   : > { %s1117_s25 = smov (!%p274_p9), 104   ;;  %s1118_s26 = smov (!%p274_p9), 80  }
  0x10   : > { %s1120_s13 = smov (!%p274_p9), 72   ;;  %s1121_s17 = smov (!%p274_p9), 8  }
  0x13   : > { %v971_v0 = vld [vmem:[%s1360_s2 + $0x38] sm:$0xff]  ;;  %v970_v2 = vld [vmem:[%s1360_s2 + $0x30] sm:$0xff]  ;;  %v969_v4 = vld [vmem:[%s1360_s2 + $0x28] sm:$0xff]  ;;  %s311_s12 = scalar_select %p310_p10, %s1190_s9, 1  ;;  %vm483_vm0 = vcmask 261120   ;;  %vm487_vm1 = vcmask 64512  }
  0x14   : > { %v979_v1 = vld [vmem:[%s1362_s4 + $0x38] sm:$0xff]  ;;  %389 = vmatpush.bf16.msra.mxu0 %v971_v0  ;;  %v978_v3 = vld [vmem:[%s1362_s4 + $0x30] sm:$0xff]  ;;  %v977_v5 = vld [vmem:[%s1362_s4 + $0x28] sm:$0xff]  ;;  %vm528_vm2 = vcmask 1043456   ;;  %vm614_vm3 = vcmask 130112   ;;  %vm679_vm4 = vcmask 195712  }
  0x15   : > { %470 = vmatpush.bf16.msra.mxu1 %v979_v1  ;;  %v968_v6 = vld [vmem:[%s1360_s2 + $0x20] sm:$0xff]  ;;  %v967_v8 = vld [vmem:[%s1360_s2 + $0x18] sm:$0xff]  ;;  %v966_v10 = vld [vmem:[%s1360_s2 + $0x10] sm:$0xff]  ;;  %s877_s20 = sshll.u32 %s311_s12, 2  ;;  %s1123_s12 = smov 16   ;;  %vm744_vm5 = vcmask 261312  }
  0x16   : > { %v976_v7 = vld [vmem:[%s1362_s4 + $0x20] sm:$0xff]  ;;  %v975_v9 = vld [vmem:[%s1362_s4 + $0x18] sm:$0xff]  ;;  %v974_v11 = vld [vmem:[%s1362_s4 + $0x10] sm:$0xff]  ;;  %s313_s10 = scalar_lea.vmem %s1358_s0, %s877_s20  ;;  %s317_s18 = scalar_lea.vmem %s1359_s1, %s877_s20 }
  0x17   : > { %v965_v12 = vld [vmem:[%s1360_s2 + $0x8] sm:$0xff]  ;;  %v964_v14 = vld [vmem:[%s1360_s2] sm:$0xff]  ;;  %s1114_s20 = smov 96  }
  0x18   : > { %390 = vmatpush.bf16.msra.mxu0 %v970_v2  ;;  %v973_v13 = vld [vmem:[%s1362_s4 + $0x8] sm:$0xff]  ;;  %v972_v15 = vld [vmem:[%s1362_s4] sm:$0xff] }
  0x19   : > { %471 = vmatpush.bf16.msra.mxu1 %v978_v3  ;;  %v319_v16 = vld [vmem:[%s313_s10] sm:$0xf]  ;;  %s1119_s10 = smov 88  }
  0x1a   : > { %v320_v17 = vld [vmem:[%s317_s18] sm:$0xf]  ;;  %s1122_s18 = smov 24  }
  0x1b   : > { %v1031_v18 = vld [vmem:[%s1361_s3] ss:$0 sm:$0xff] }
  0x1c   : > { %391 = vmatpush.bf16.msra.mxu0 %v969_v4  ;;  %v1032_v19 = vld [vmem:[%s1363_s5] ss:$0 sm:$0xff] }
  0x1d   : > { %472 = vmatpush.bf16.msra.mxu1 %v977_v5 }
  0x20   : > { %392 = vmatpush.bf16.msra.mxu0 %v968_v6 }
  0x21   : > { %473 = vmatpush.bf16.msra.mxu1 %v976_v7 }
  0x24   : > { %393 = vmatpush.bf16.msra.mxu0 %v967_v8 }
  0x25   : > { %474 = vmatpush.bf16.msra.mxu1 %v975_v9 }
  0x28   : > { %394 = vmatpush.bf16.msra.mxu0 %v966_v10 }
  0x29   : > { %475 = vmatpush.bf16.msra.mxu1 %v974_v11 }
  0x2c   : > { %395 = vmatpush.bf16.msra.mxu0 %v965_v12 }
  0x2d   : > { %476 = vmatpush.bf16.msra.mxu1 %v973_v13 }
  0x30   : > { %396 = vmatpush.bf16.msra.mxu0 %v964_v14 }
  0x31   : > { %477 = vmatpush.bf16.msra.mxu1 %v972_v15 }
  0x33   : > { %397 = vmatmul.bf16.vlgmr.msra.gmra.mxu0 %v319_v16 }
  0x34   : > { %478 = vmatmul.bf16.vlgmr.msra.gmra.mxu1 %v320_v17 }
  0xb0   : > { %v398_v20 = vpop.f32.mrf.mxu0 }
  0xb1   : > { %v479_v21 = vpop.f32.mrf.mxu1  ;;  %v399_v22 = vadd.f32 %v1031_v18, %v398_v20 }
  0xb2   : > { %v480_v23 = vadd.f32 %v1032_v19, %v479_v21 }
  0xb3   : > { %484 = vst.msk [vmem:[#allocation2] sm:$0xff] %vm483_vm0, %v399_v22  ;;  %v485_v24 = vpack.c.bf16 %v399_v22, %v399_v22 }
  0xb4   : > { %v486_v25 = vpack.c.bf16 %v480_v23, %v480_v23 }
  0xb5   : > { %v549_v28 = vunpack.c.l.b16 %v485_v24 }
  0xb6   : > { %v521_v26 = vunpack.c.l.b16 %v486_v25  ;;  %v492_v27 = vsel %vm487_vm1, %v486_v25, 0 }
  0xb7   : > { %501 = vmatpush.bf16.xpose.msra.mxu2 %v492_v27  ;;  %v550_v30 = vpack.c.b16 %v549_v28, %v549_v28 }
  0xb8   : > { %v1281_v29 = vpack.c.b16 %v521_v26, %v521_v26  ;;  %v400_v31 = vpop.f32.mrf.mxu0 }
  0xb9   : > { %v481_v32 = vpop.f32.mrf.mxu1  ;;  %551 = vrot.lane.b32.xlu2 %v550_v30, %s1115_s23 }
  0xba   : > { %523 = vrot.lane.b32.xlu1 %v1281_v29, %s1114_s20  ;;  %v545_v62 = vld [vmem:[#allocation2] sm:$0xff] }
  0xbe   : > { %943 = vmatmul.msk.bf16.vlgmr.msra.gmra.mxu2 %vm487_vm1, %v485_v24 }
  0xc1   : > { %618 = vrot.lane.b32.xlu2 %v1281_v29, %s1116_s24 }
  0xc2   : > { %553 = vrot.lane.b32.xlu1 %v1281_v29, %s1115_s23  ;;  %s307_s23 = sand.u32 1, %s1104_s28  }
  0xc3   : > { %s786_s22 = scalar_lea.sflag [#allocation4], %s307_s23 }
  0xc9   : > { %681 = vrot.lane.b32.xlu2 %v550_v30, %s1117_s25 }
  0xca   : > { %683 = vrot.lane.b32.xlu1 %v1281_v29, %s1117_s25  ;;  %s876_s25 = sshll.u32 %s307_s23, 3 }
 0x113   : > { %v552_v35 = vpop.permute.xlu2 %551 }
 0x11b   : > { %v619_v38 = vpop.permute.xlu2 %618 }
 0x11c   : > { %v624_v59 = vsel %vm487_vm1, %v619_v38, 0 }
 0x123   : > { %v682_v43 = vpop.permute.xlu2 %681 }
 0x12c   : > { %v524_v33 = vpop.permute.xlu1 %523 }
 0x12d   : > { %v530_v34 = vsel %vm528_vm2, %v524_v33, 0 }
 0x12e   : > { %539 = vmatpush.bf16.msra.mxu3 %v530_v34 }
 0x134   : > { %v554_v36 = vpop.permute.xlu1 %553 }
 0x135   : > { %v559_v37 = vsel %vm487_vm1, %v554_v36, 0 }
 0x136   : > { %568 = vmatpush.bf16.xpose.msrb.mxu3 %v559_v37 }
 0x13c   : > { %v684_v39 = vpop.permute.xlu1 %683 }
 0x13d   : > { %v689_v40 = vsel %vm487_vm1, %v684_v39, 0 }
 0x13e   : > { %698 = vmatpush.bf16.xpose.msrb.mxu0 %v689_v40 }
 0x141   : > { %v503_v41 = vpop.f32.mrf.mxu2 }
 0x142   : > { %v507_v42 = vmul.f32 0.35355338, %v503_v41 }
 0x144   : > { %v508_v44 = vsel %vm487_vm1, %v507_v42, -inf }
 0x145   : > { %949 = vmatmul.msk.bf16.vlgmr.msrb.gmra.mxu0 %vm487_vm1, %v682_v43  ;;  %509 = vmax.xlane.f32.xlu0 %v508_v44 }
 0x149   : > { %v505_v45 = vpop.f32.mrf.mxu2 }
 0x1b8   : > { %v510_v46 = vpop.xlane.xlu0 %509 }
 0x1b9   : > { %v511_v47 = vsub.f32 %v507_v42, %v510_v46 }
 0x1bb   : > { %v512_v48 = vmul.f32 1.442695, %v511_v47 }
 0x1bd   : > { %1034 = vpow2.f32 %v512_v48  ;;  %v981_v48 = vld [vmem:[%s1364_s6 + $0x8] sm:$0xff] }
 0x1c2   : > { %v700_v49 = vpop.f32.mrf.mxu0 }
 0x1c3   : > { %v1035_v50 = vpop.eup %1034  ;;  %v704_v53 = vmul.f32 0.35355338, %v700_v49  ;;  %v980_v49 = vld [vmem:[%s1364_s6] sm:$0xff] }
 0x1c4   : > { %v514_v51 = vsel %vm487_vm1, %v1035_v50, 0.0 }
 0x1c5   : > { %515 = vadd.xlane.f32.xlu0 %v514_v51  ;;  %v705_v54 = vsel %vm487_vm1, %v704_v53, -inf }
 0x1ca   : > { %v702_v52 = vpop.f32.mrf.mxu0 }
 0x1d9   : > { %616 = vrot.lane.b32.xlu0 %v550_v30, %s1116_s24  ;;  %s961_s24 = sshll.u32 %s1190_s9, 3 }
 0x203   : > { %706 = vmax.xlane.f32.xlu0 %v705_v54 }
 0x217   : > { %652 = vrot.lane.b32.xlu0 %v1281_v29, %s1118_s26 }
 0x238   : > { %v516_v55 = vpop.xlane.xlu0 %515 }
 0x239   : > { %1036 = vrcp.f32 %v516_v55 }
 0x23f   : > { %v1037_v56 = vpop.eup %1036 }
 0x240   : > { %v518_v57 = vmul.f32 %v1037_v56, %v1035_v50 }
 0x242   : > { %v519_v58 = vpack.c.bf16 %v518_v57, %v518_v57 }
 0x244   : > { %944 = vmatmul.msk.bf16.vlgmr.msra.gmra.mxu3 %vm487_vm1, %v519_v58 }
 0x245   : > { %633 = vmatpush.bf16.xpose.msra.mxu3 %v624_v59 }
 0x24b   : > { %v617_v60 = vpop.permute.xlu0 %616 }
 0x254   : > { %945 = vmatmul.msk.bf16.vlgmr.msrb.gmra.mxu3 %vm487_vm1, %v552_v35 }
 0x255   : > { %777 = vmatpush.bf16.msrb.mxu3 %v981_v48 }
 0x259   : > { %778 = vmatpush.bf16.msrb.mxu3 %v980_v49 }
 0x264   : > { %947 = vmatmul.msk.bf16.vlgmr.msra.gmra.mxu3 %vm487_vm1, %v617_v60 }
 0x276   : > { %v707_v4 = vpop.xlane.xlu0 %706 }
 0x277   : > { %v708_v6 = vsub.f32 %v704_v53, %v707_v4 }
 0x279   : > { %v709_v7 = vmul.f32 1.442695, %v708_v6 }
 0x27b   : > { %1038 = vpow2.f32 %v709_v7 }
 0x281   : > { %v1039_v11 = vpop.eup %1038 }
 0x282   : > { %v711_v13 = vsel %vm487_vm1, %v1039_v11, 0.0 }
 0x289   : > { %v653_v22 = vpop.permute.xlu0 %652 }
 0x28a   : > { %v658_v25 = vsel %vm528_vm2, %v653_v22, 0 }
 0x2c7   : > { %v541_v61 = vpop.f32.mrf.mxu3 }
 0x2c8   : > { %v546_v63 = vadd.f32 %v545_v62, %v541_v61  ;;  %v1033_v61 = vld [vmem:[%s1365_s7] ss:$0 sm:$0xff] }
 0x2ca   : > { %547 = vst.msk [vmem:[#allocation2] sm:$0xff] %vm487_vm1, %v546_v63 }
 0x2cf   : > { %v543_v0 = vpop.f32.mrf.mxu3 }
 0x2d1   : > { %v608_v51 = vld [vmem:[#allocation2] sm:$0xff] }
 0x2d7   : > { %v570_v1 = vpop.f32.mrf.mxu3 }
 0x2d8   : > { %v574_v2 = vmul.f32 0.35355338, %v570_v1 }
 0x2da   : > { %v575_v3 = vsel %vm487_vm1, %v574_v2, -inf }
 0x2db   : > { %576 = vmax.xlane.f32.xlu1 %v575_v3 }
 0x2df   : > { %v572_v5 = vpop.f32.mrf.mxu3 }
 0x2e7   : > { %v635_v8 = vpop.f32.mrf.mxu3 }
 0x2e8   : > { %v639_v9 = vmul.f32 0.35355338, %v635_v8 }
 0x2ea   : > { %v640_v10 = vsel %vm487_vm1, %v639_v9, -inf }
 0x2eb   : > { %641 = vmax.xlane.f32.xlu2 %v640_v10 }
 0x2ef   : > { %v637_v12 = vpop.f32.mrf.mxu3 }
 0x2f3   : > { %712 = vadd.xlane.f32.xlu2 %v711_v13 }
 0x2f4   : > { %587 = vrot.lane.b32.xlu1 %v1281_v29, %s1119_s10  ;;  %s1070_s10 = scalar_lea.hbm %s1366_s8, 16 }
 0x34e   : > { %v577_v14 = vpop.xlane.xlu1 %576 }
 0x34f   : > { %v578_v15 = vsub.f32 %v574_v2, %v577_v14 }
 0x351   : > { %v579_v16 = vmul.f32 1.442695, %v578_v15 }
 0x353   : > { %1040 = vpow2.f32 %v579_v16 }
 0x359   : > { %v1041_v17 = vpop.eup %1040 }
 0x35a   : > { %v581_v18 = vsel %vm487_vm1, %v1041_v17, 0.0 }
 0x35b   : > { %582 = vadd.xlane.f32.xlu2 %v581_v18 }
 0x35e   : > { %v642_v19 = vpop.xlane.xlu2 %641 }
 0x35f   : > { %v643_v20 = vsub.f32 %v639_v9, %v642_v19 }
 0x361   : > { %v644_v21 = vmul.f32 1.442695, %v643_v20 }
 0x363   : > { %1042 = vpow2.f32 %v644_v21 }
 0x366   : > { %v588_v23 = vpop.permute.xlu1 %587  ;;  %v713_v28 = vpop.xlane.xlu2 %712 }
 0x367   : > { %v593_v24 = vsel %vm528_vm2, %v588_v23, 0 }
 0x368   : > { %602 = vmatpush.bf16.msrb.mxu2 %v593_v24 }
 0x369   : > { %v1043_v26 = vpop.eup %1042 }
 0x36a   : > { %v646_v27 = vsel %vm487_vm1, %v1043_v26, 0.0 }
 0x36b   : > { %647 = vadd.xlane.f32.xlu2 %v646_v27 }
 0x36c   : > { %667 = vmatpush.bf16.msra.mxu2 %v658_v25 }
 0x383   : > { %717 = vrot.lane.b32.xlu2 %v1281_v29, %s1120_s13  ;;  %s796_s13 = scalar_lea.hbm %s1366_s8, %s961_s24 }
 0x384   : > { %s800_s21 = sshll.u32 %s796_s13, 4  ;;  %s801_s21 = int_to_ptr.hbm [resolvable:$true] %s800_s21 }
 0x385   : > { %s1064_s9 = sshra.s32 %s801_s21, 4  ;;  %s1065_s9 = int_to_ptr.hbm [resolvable:$true] %s1064_s9 }
 0x386   : > { %s1066_s20 = scalar_lea.hbm %s1065_s9, 8  ;;  %p1071_p0 = scmp.lt.s32.totalorder %s1065_s9, %s1366_s8 }
 0x387   : > { %p1067_p11 = scmp.ne.s32.totalorder %s1065_s9, %s1066_s20  ;;  %p1072_p1 = scmp.lt.s32.totalorder %s1070_s10, %s1066_s20 }
 0x389   : > { %p1068_p12 = pnand %p1067_p11, %p1207_p5  ;;  %p1073_p2 = por %p1072_p1, %p1071_p0 }
 0x38b   : > { %p1069_p13 = pneg %p1068_p12 }
 0x38d   : > { %p1074_p3 = pnand %p1073_p2, %p1069_p13 }
 0x3ce   : > { %v583_v30 = vpop.xlane.xlu2 %582 }
 0x3cf   : > { %1044 = vrcp.f32 %v583_v30 }
 0x3d0   : > { %1046 = vrcp.f32 %v713_v28 }
 0x3d5   : > { %v1045_v31 = vpop.eup %1044 }
 0x3d6   : > { %v585_v32 = vmul.f32 %v1045_v31, %v1041_v17  ;;  %v1047_v35 = vpop.eup %1046 }
 0x3d7   : > { %v715_v37 = vmul.f32 %v1047_v35, %v1039_v11 }
 0x3d8   : > { %v586_v33 = vpack.c.bf16 %v585_v32, %v585_v32 }
 0x3d9   : > { %v716_v29 = vpack.c.bf16 %v715_v37, %v715_v37 }
 0x3da   : > { %946 = vmatmul.msk.bf16.vlgmr.msrb.gmra.mxu2 %vm487_vm1, %v586_v33 }
 0x3de   : > { %v648_v34 = vpop.xlane.xlu2 %647 }
 0x3df   : > { %1048 = vrcp.f32 %v648_v34 }
 0x3e5   : > { %v1049_v36 = vpop.eup %1048 }
 0x3e6   : > { %v650_v38 = vmul.f32 %v1049_v36, %v1043_v26  ;;  %v718_v39 = vpop.permute.xlu2 %717 }
 0x3e7   : > { %v723_v40 = vsel %vm528_vm2, %v718_v39, 0 }
 0x3e8   : > { %v651_v41 = vpack.c.bf16 %v650_v38, %v650_v38  ;;  %732 = vmatpush.bf16.msrb.mxu1 %v723_v40 }
 0x3ea   : > { %948 = vmatmul.msk.bf16.vlgmr.msra.gmra.mxu2 %vm487_vm1, %v651_v41 }
 0x3eb   : > { %950 = vmatmul.msk.bf16.vlgmr.msrb.gmra.mxu1 %vm487_vm1, %v716_v29 }
 0x45d   : > { %v604_v42 = vpop.f32.mrf.mxu2 }
 0x45e   : > { %610 = vrot.lane.b32.xlu1 %v604_v42, %s1121_s17 }
 0x465   : > { %v606_v43 = vpop.f32.mrf.mxu2 }
 0x468   : > { %v734_v44 = vpop.f32.mrf.mxu1 }
 0x469   : > { %740 = vrot.lane.b32.xlu1 %v734_v44, %s1122_s18 }
 0x46d   : > { %v669_v45 = vpop.f32.mrf.mxu2 }
 0x46e   : > { %675 = vrot.lane.b32.xlu0 %v669_v45, %s1123_s12  ;;  %s309_s12 = scalar_lea.vmem [#allocation3], %s876_s25 }
 0x46f   : > { %s798_s19 = sshll.u32 %s309_s12, 4  ;;  %s799_s19 = int_to_ptr.vmem [resolvable:$true] %s798_s19 }
 0x470   : > { %v736_v46 = vpop.f32.mrf.mxu1 }
 0x475   : > { %v671_v47 = vpop.f32.mrf.mxu2 }
 0x4d0   : > { %v611_v50 = vpop.permute.xlu1 %610 }
 0x4d1   : > { %v613_v52 = vadd.f32 %v611_v50, %v608_v51 }
 0x4d3   : > { %615 = vst.msk [vmem:[#allocation2] sm:$0xff] %vm614_vm3, %v613_v52 }
 0x4da   : > { %v673_v54 = vld [vmem:[#allocation2] sm:$0xff] }
 0x4db   : > { %v741_v56 = vpop.permute.xlu1 %740 }
 0x4e0   : > { %v676_v53 = vpop.permute.xlu0 %675 }
 0x4e1   : > { %v678_v55 = vadd.f32 %v676_v53, %v673_v54 }
 0x4e3   : > { %680 = vst.msk [vmem:[#allocation2] sm:$0xff] %vm679_vm4, %v678_v55 }
 0x4ea   : > { %v738_v57 = vld [vmem:[#allocation2] sm:$0xff] }
 0x4eb   : > { %v743_v58 = vadd.f32 %v741_v56, %v738_v57 }
 0x4ed   : > { %745 = vst.msk [vmem:[#allocation2] sm:$0xff] %vm744_vm5, %v743_v58 }
 0x4f4   : > { %v746_v59 = vld [vmem:[#allocation2] sm:$0xff] }
 0x4f5   : > { %v747_v60 = vpack.c.bf16 %v746_v59, %v746_v59 }
 0x4f7   : > { %959 = vmatmul.msk.bf16.vlgmr.msrb.gmra.mxu3 %vm483_vm0, %v747_v60 }
 0x57a   : > { %v780_v62 = vpop.f32.mrf.mxu3 }
 0x57b   : > { %v781_v63 = vadd.f32 %v1033_v61, %v780_v62 }
 0x57d   : > { %784 = vst [vmem:[%s309_s12] sm:$0xff] %v781_v63 }
 0x57e   : > { %1077 = shalt.err (!%p1074_p3)
}
 0x57f   : > { %982 = dma.vmem_to_hbm [thread:$0]  (%p1207_p5), %s799_s19, 128, %s801_s21, %s786_s22  }
 0x582   : > { %v782_v0 = vpop.f32.mrf.mxu3 }
 0x583 PF: > { %p988_p4 = scmp.ge.s32.totalorder %s1112_s30, 2  ;;  %s812_s23 = sand.u32 1, %s1100_s27  }
 0x584   : > { %s813_s13 = scalar_lea.sflag [#allocation4], %s812_s23 }
 0x585   : > { %p985_p7 = pnand %p988_p4, %p1211_p6 }
 0x587   : > { %p986_p8 = pneg %p985_p7 }
 0x589   : > { %1095 = dma.done.wait (%p986_p8), %s813_s13, 128  }
 0x58a   : > { %1097 = vsyncadd (%p986_p8), %s813_s13, 4294967168  ;;  %p18_p9 = scmp.ge.s32.totalorder %s1194_s11, 4   ;;  %s1369_s27 = smov %s1104_s28 }
 0x58b   : > { %s1370_s28 = smov %s1108_s29  ;;  %s1371_s29 = smov %s1205_s14 }
 0x58c   : > { %s1372_s30 = smov %s1194_s11  ;;  %20 = sbr.rel (!%p18_p9) target bundleno = 3 (0x3), region = 90 }
 0x591   :  { %819 = vsyncpa [#allocation4], 1 }
 0x592   :  { %821 = vsyncpa [#allocation4 + $0x1], 1 }

</bundles_post_ra>
